<compile_context>
chip_gen: v6e
topology: v6e:2x2x1
jax: 0.10.0
libtpu: 0.0.40
codegen_flags: <defaults>
</compile_context>

<pallas_src>
import functools

import jax
import jax.numpy as jnp
from jax import lax
from jax.experimental import pallas as pl
from jax.experimental.pallas import tpu as pltpu

_UNROLL = 8  # row-chunk unroll for the gather loops


# -----------------------------------------------------------------------------
# Shared MLP (feature-major: features on sublanes, batch on lanes)
# -----------------------------------------------------------------------------
def _mlp_feature_major(x, w1, b1, w2, b2, w3, b3, w4, b4, norm_min, norm_range):
    # x: (TB, 2E) gathered features (batch-major as gathered).
    # Layer 1: contract 2E -> (H1, TB).  BN folded into w/b.
    h = lax.dot_general(w1, x, (((0,), (1,)), ((), ())),
                        preferred_element_type=jnp.float32)
    h = jnp.maximum(h + b1, 0.0)
    # Layer 2: (H1,H2)^T @ (H1,TB) -> (H2, TB)
    h = lax.dot_general(w2, h, (((0,), (0,)), ((), ())),
                        preferred_element_type=jnp.float32)
    h = jnp.maximum(h + b2, 0.0)
    # Layer 3: (H2,H3)^T @ (H2,TB) -> (H3, TB)
    h = lax.dot_general(w3, h, (((0,), (0,)), ((), ())),
                        preferred_element_type=jnp.float32)
    h = jnp.maximum(h + b3, 0.0)
    # Output layer (M=1, K=16): VPU broadcast-multiply + sublane reduce, keeps
    # the MXU result path clear and lands lane-dense as (1, TB).
    z = jnp.sum(w4 * h, axis=0, keepdims=True) + b4
    y = jax.nn.sigmoid(z)
    return y * jnp.float32(norm_range) + jnp.float32(norm_min)


# -----------------------------------------------------------------------------
# Kernel A: VMEM-resident embedding tables (small/medium hash sizes)
# -----------------------------------------------------------------------------
def ncf_vmem_kernel(uid_ref, iid_ref,                 # SMEM scalar prefetch
                    utab_ref, itab_ref,               # VMEM-resident tables
                    w1_ref, b1_ref, w2_ref, b2_ref,
                    w3_ref, b3_ref, w4_ref, b4_ref,   # folded weights (resident)
                    out_ref,                          # (1, TB) lane-dense block
                    xbuf,                             # (TB, 2E) gather scratch
                    *, emb_size, norm_min, norm_range):
    E = emb_size
    TB = out_ref.shape[1]
    base = pl.program_id(0) * TB

    # Row gather from the VMEM tables (no DMA descriptors / HBM latency).
    # TODO(synk): replace with a vectorized dynamic_gather when shape
    #             constraints allow; the chunked slice-copy below is the
    #             universally-supported form.
    def gather_chunk(c, carry):
        r0 = pl.multiple_of(c * _UNROLL, _UNROLL)
        for j in range(_UNROLL):
            u_idx = uid_ref[base + r0 + j]
            i_idx = iid_ref[base + r0 + j]
            xbuf[pl.ds(r0 + j, 1), pl.ds(0, E)] = utab_ref[pl.ds(u_idx, 1), :]
            xbuf[pl.ds(r0 + j, 1), pl.ds(E, E)] = itab_ref[pl.ds(i_idx, 1), :]
        return carry

    lax.fori_loop(0, TB // _UNROLL, gather_chunk, 0)

    out_ref[...] = _mlp_feature_major(
        xbuf[...], w1_ref[...], b1_ref[...], w2_ref[...], b2_ref[...],
        w3_ref[...], b3_ref[...], w4_ref[...], b4_ref[...],
        norm_min, norm_range)


# -----------------------------------------------------------------------------
# Kernel B: HBM embedding tables + manual DMA row gather (large hash sizes)
# -----------------------------------------------------------------------------
def ncf_hbm_kernel(uid_ref, iid_ref,                  # SMEM scalar prefetch
                   utab_hbm, itab_hbm,                # HBM tables (ANY)
                   w1_ref, b1_ref, w2_ref, b2_ref,
                   w3_ref, b3_ref, w4_ref, b4_ref,
                   out_ref,
                   xbuf, sem,                         # scratch + DMA semaphore
                   *, emb_size, norm_min, norm_range):
    E = emb_size
    TB = out_ref.shape[1]
    base = pl.program_id(0) * TB

    # Unrolled descriptor issue: hoist the SMEM index loads per chunk, then
    # issue the 2*_UNROLL row copies; every copy signals the same semaphore.
    def issue_chunk(c, carry):
        r0 = pl.multiple_of(c * _UNROLL, _UNROLL)
        uids = [uid_ref[base + r0 + j] for j in range(_UNROLL)]
        iids = [iid_ref[base + r0 + j] for j in range(_UNROLL)]
        for j in range(_UNROLL):
            pltpu.make_async_copy(
                utab_hbm.at[pl.ds(uids[j], 1), :],
                xbuf.at[pl.ds(r0 + j, 1), pl.ds(0, E)], sem.at[0]).start()
            pltpu.make_async_copy(
                itab_hbm.at[pl.ds(iids[j], 1), :],
                xbuf.at[pl.ds(r0 + j, 1), pl.ds(E, E)], sem.at[0]).start()
        return carry

    lax.fori_loop(0, TB // _UNROLL, issue_chunk, 0)

    # ONE bulk wait: DMA semaphores count bytes.  The dummy descriptor below
    # covers exactly TB * 2E * 4 bytes == the total of the 2*TB row copies
    # issued above (same dtype, same element count).  Its src/dst are
    # in-bounds VMEM views; .wait() moves no data.
    pltpu.make_async_copy(xbuf, xbuf, sem.at[0]).wait()

    out_ref[...] = _mlp_feature_major(
        xbuf[...], w1_ref[...], b1_ref[...], w2_ref[...], b2_ref[...],
        w3_ref[...], b3_ref[...], w4_ref[...], b4_ref[...],
        norm_min, norm_range)


# -----------------------------------------------------------------------------
# Raw parameters (mimic the PyTorch init) + BN folding for the kernel
# -----------------------------------------------------------------------------
def make_params(key, user_count, item_count, embedding_size=64,
                hidden_layers=(128, 64, 32, 16)):
    assert embedding_size * 2 == hidden_layers[0]
    keys = jax.random.split(key, 6)

    emb_range = 0.05
    user_emb = jax.random.uniform(keys[0], (user_count, embedding_size),
                                  jnp.float32, -emb_range, emb_range)
    item_emb = jax.random.uniform(keys[1], (item_count, embedding_size),
                                  jnp.float32, -emb_range, emb_range)

    def kaiming_linear(k, fan_in, fan_out):
        # torch.nn.init.kaiming_uniform_(mode='fan_in', nonlinearity='relu')
        bound = (6.0 / fan_in) ** 0.5
        w = jax.random.uniform(k, (fan_in, fan_out), jnp.float32, -bound, bound)
        b = jnp.full((1, fan_out), 0.01, jnp.float32)
        return w, b

    def bn_default(nf):
        return dict(gamma=jnp.ones((nf,), jnp.float32),
                    beta=jnp.zeros((nf,), jnp.float32),
                    mean=jnp.zeros((nf,), jnp.float32),
                    var=jnp.ones((nf,), jnp.float32))

    d = list(hidden_layers)                      # (128, 64, 32, 16)
    w1, b1 = kaiming_linear(keys[2], d[0], d[1])
    w2, b2 = kaiming_linear(keys[3], d[1], d[2])
    w3, b3 = kaiming_linear(keys[4], d[2], d[3])
    w4, b4 = kaiming_linear(keys[5], d[3], 1)
    return dict(user_emb=user_emb, item_emb=item_emb,
                w1=w1, b1=b1, bn1=bn_default(d[1]),
                w2=w2, b2=b2, bn2=bn_default(d[2]),
                w3=w3, b3=b3, bn3=bn_default(d[3]),
                w4=w4, b4=b4)


def fold_params(raw, eps=1e-5):
    """Fold inference BatchNorm into the preceding Linear; biases as (H,1)."""
    def fold(w, b, bn):
        s = bn["gamma"] / jnp.sqrt(bn["var"] + eps)
        t = bn["beta"] - bn["mean"] * s
        return w * s[None, :], b * s[None, :] + t[None, :]

    w1f, b1f = fold(raw["w1"], raw["b1"], raw["bn1"])
    w2f, b2f = fold(raw["w2"], raw["b2"], raw["bn2"])
    w3f, b3f = fold(raw["w3"], raw["b3"], raw["bn3"])
    return dict(user_emb=raw["user_emb"], item_emb=raw["item_emb"],
                w1=w1f, b1=b1f.T,            # (2E,H1), (H1,1)
                w2=w2f, b2=b2f.T,            # (H1,H2), (H2,1)
                w3=w3f, b3=b3f.T,            # (H2,H3), (H3,1)
                w4=raw["w4"], b4=raw["b4"])  # (H3,1),  (1,1)


# -----------------------------------------------------------------------------
# Wrapper around pallas_call
# -----------------------------------------------------------------------------
def ncf_forward(user_id, item_id, kparams, *, user_hash_size,
                output_range=(1, 5), batch_tile=256,
                force_hbm_tables=False,
                vmem_table_budget_bytes=12 << 20):
    B = int(user_id.shape[0])
    TB = int(batch_tile)
    assert TB % 128 == 0 and TB % _UNROLL == 0, "batch_tile must be a multiple of 128"
    G = -(-B // TB)
    B_pad = G * TB

    user_emb = kparams["user_emb"]
    item_emb = kparams["item_emb"]
    E = user_emb.shape[1]
    assert kparams["w1"].shape[0] == 2 * E

    norm_min = float(min(output_range))
    norm_range = float(abs(output_range[0] - output_range[1]))

    # NOTE: the original PyTorch module applies user_hash_size to BOTH user and
    # item ids -- semantics preserved.  Modulo + padding done on the host side.
    uid = jnp.mod(user_id.astype(jnp.int32), user_hash_size)
    iid = jnp.mod(item_id.astype(jnp.int32), user_hash_size)
    pad = B_pad - B
    uid = jnp.pad(uid, (0, pad))
    iid = jnp.pad(iid, (0, pad))

    table_bytes = int(user_emb.size * user_emb.dtype.itemsize
                      + item_emb.size * item_emb.dtype.itemsize)
    tables_in_vmem = (not force_hbm_tables) and (table_bytes <= vmem_table_budget_bytes)

    def resident(a):
        return pl.BlockSpec(a.shape, lambda g, u, i: (0, 0))

    weight_specs = [resident(kparams[k])
                    for k in ("w1", "b1", "w2", "b2", "w3", "b3", "w4", "b4")]

    if tables_in_vmem:
        kernel = functools.partial(ncf_vmem_kernel, emb_size=E,
                                   norm_min=norm_min, norm_range=norm_range)
        table_specs = [resident(user_emb), resident(item_emb)]
        scratch = [pltpu.VMEM((TB, 2 * E), jnp.float32)]
        # v7x has only 64 MiB physical VMEM (32 MiB default scoped): set the
        # limit explicitly with headroom over tables + weights + scratch,
        # capped well below the smallest physical VMEM.
        vmem_limit = int(min(48 << 20, max(32 << 20, table_bytes + (8 << 20))))
        cparams = pltpu.CompilerParams(dimension_semantics=("parallel",),
                                       vmem_limit_bytes=vmem_limit)
    else:
        kernel = functools.partial(ncf_hbm_kernel, emb_size=E,
                                   norm_min=norm_min, norm_range=norm_range)
        table_specs = [pl.BlockSpec(memory_space=pl.ANY),
                       pl.BlockSpec(memory_space=pl.ANY)]
        scratch = [pltpu.VMEM((TB, 2 * E), jnp.float32),
                   pltpu.SemaphoreType.DMA((1,))]
        cparams = pltpu.CompilerParams(dimension_semantics=("parallel",))

    grid_spec = pltpu.PrefetchScalarGridSpec(
        num_scalar_prefetch=2,                        # uid, iid -> SMEM
        grid=(G,),
        in_specs=table_specs + weight_specs,
        # Lane-major output: sublane extent 1 == full dim, lane extent TB%128==0
        out_specs=pl.BlockSpec((1, TB), lambda g, u, i: (0, g)),
        scratch_shapes=scratch,
    )

    out = pl.pallas_call(
        kernel,
        out_shape=jax.ShapeDtypeStruct((1, B_pad), jnp.float32),
        grid_spec=grid_spec,
        compiler_params=cparams,
    )(uid, iid,
      user_emb, item_emb,
      kparams["w1"], kparams["b1"], kparams["w2"], kparams["b2"],
      kparams["w3"], kparams["b3"], kparams["w4"], kparams["b4"])

    return out.reshape(B_pad)[:B].reshape(B, 1)


# -----------------------------------------------------------------------------
# Pure-JAX reference (raw params, explicit BatchNorm) for correctness check
# -----------------------------------------------------------------------------
def ncf_reference(user_id, item_id, raw, *, user_hash_size,
                  output_range=(1, 5), eps=1e-5):
    norm_min = float(min(output_range))
    norm_range = float(abs(output_range[0] - output_range[1]))
    uid = jnp.mod(user_id.astype(jnp.int32), user_hash_size)
    iid = jnp.mod(item_id.astype(jnp.int32), user_hash_size)
    x = jnp.concatenate([raw["user_emb"][uid], raw["item_emb"][iid]], axis=1)
    for i in (1, 2, 3):
        x = x @ raw[f"w{i}"] + raw[f"b{i}"]
        bn = raw[f"bn{i}"]
        x = (x - bn["mean"]) / jnp.sqrt(bn["var"] + eps) * bn["gamma"] + bn["beta"]
        x = jnp.maximum(x, 0.0)
    x = jax.nn.sigmoid(x @ raw["w4"] + raw["b4"])
    return x * norm_range + norm_min


if __name__ == "__main__":
    key = jax.random.PRNGKey(0)
    k_params, k_uid, k_iid, k_uid2, k_iid2 = jax.random.split(key, 5)

    USER_COUNT = 32
    ITEM_COUNT = 48
    EMBEDDING_SIZE = 64
    HIDDEN_LAYERS = (128, 64, 32, 16)
    BATCH = 8

    raw = make_params(k_params, USER_COUNT, ITEM_COUNT,
                      embedding_size=EMBEDDING_SIZE, hidden_layers=HIDDEN_LAYERS)
    kparams = fold_params(raw)

    user_ids = jax.random.randint(k_uid, (BATCH,), 0, USER_COUNT, dtype=jnp.int32)
    item_ids = jax.random.randint(k_iid, (BATCH,), 0, USER_COUNT, dtype=jnp.int32)
    ref = ncf_reference(user_ids, item_ids, raw,
                        user_hash_size=USER_COUNT, output_range=(1, 5))

    # Path 1: VMEM-resident tables (default; tables are tiny here), G = 1.
    out_vmem = jax.block_until_ready(
        ncf_forward(user_ids, item_ids, kparams,
                    user_hash_size=USER_COUNT, output_range=(1, 5)))
    assert out_vmem.shape == (BATCH, 1)
    assert jnp.allclose(out_vmem, ref, atol=1e-4, rtol=1e-4), (out_vmem, ref)

    # Path 2: HBM tables + manual DMA gather (large-table fallback), G = 1.
    out_hbm = jax.block_until_ready(
        ncf_forward(user_ids, item_ids, kparams,
                    user_hash_size=USER_COUNT, output_range=(1, 5),
                    force_hbm_tables=True))
    assert jnp.allclose(out_hbm, ref, atol=1e-4, rtol=1e-4), (out_hbm, ref)

    # Multi-tile check (G = 3, padded last tile) on both paths, batch_tile=128.
    B2 = 300
    user_ids2 = jax.random.randint(k_uid2, (B2,), 0, USER_COUNT, dtype=jnp.int32)
    item_ids2 = jax.random.randint(k_iid2, (B2,), 0, USER_COUNT, dtype=jnp.int32)
    ref2 = ncf_reference(user_ids2, item_ids2, raw,
                         user_hash_size=USER_COUNT, output_range=(1, 5))

    out2_vmem = jax.block_until_ready(
        ncf_forward(user_ids2, item_ids2, kparams,
                    user_hash_size=USER_COUNT, output_range=(1, 5),
                    batch_tile=128))
    assert out2_vmem.shape == (B2, 1)
    assert jnp.allclose(out2_vmem, ref2, atol=1e-4, rtol=1e-4)

    out2_hbm = jax.block_until_ready(
        ncf_forward(user_ids2, item_ids2, kparams,
                    user_hash_size=USER_COUNT, output_range=(1, 5),
                    batch_tile=128, force_hbm_tables=True))
    assert jnp.allclose(out2_hbm, ref2, atol=1e-4, rtol=1e-4)

    print("KERNEL_OK")
</pallas_src>

<mosaic_0001>
module attributes {stable_mosaic.version = 11 : i64} {
  func.func @ncf_vmem_kernel(%arg0: i32, %arg1: memref<256xi32, #tpu.memory_space<smem>>, %arg2: memref<256xi32, #tpu.memory_space<smem>>, %arg3: memref<32x64xf32, #tpu.memory_space<vmem>>, %arg4: memref<48x64xf32, #tpu.memory_space<vmem>>, %arg5: memref<128x64xf32, #tpu.memory_space<vmem>>, %arg6: memref<64x1xf32, #tpu.memory_space<vmem>>, %arg7: memref<64x32xf32, #tpu.memory_space<vmem>>, %arg8: memref<32x1xf32, #tpu.memory_space<vmem>>, %arg9: memref<32x16xf32, #tpu.memory_space<vmem>>, %arg10: memref<16x1xf32, #tpu.memory_space<vmem>>, %arg11: memref<16x1xf32, #tpu.memory_space<vmem>>, %arg12: memref<1x1xf32, #tpu.memory_space<vmem>>, %arg13: memref<1x256xf32, #tpu.memory_space<vmem>>, %arg14: memref<256x128xf32, #tpu.memory_space<vmem>>) attributes {dimension_semantics = [#tpu.dimension_semantics<parallel>], iteration_bounds = array<i64: 1>, scalar_prefetch = 2 : i64, scratch_operands = 1 : i64, tpu.core_type = #tpu.core_type<tc>, window_params = [{pipeline_mode = #tpu.pipeline_mode<synchronous>, transform_indices = @transform_0, window_bounds = array<i64: 32, 64>}, {pipeline_mode = #tpu.pipeline_mode<synchronous>, transform_indices = @transform_1, window_bounds = array<i64: 48, 64>}, {pipeline_mode = #tpu.pipeline_mode<synchronous>, transform_indices = @transform_2, window_bounds = array<i64: 128, 64>}, {pipeline_mode = #tpu.pipeline_mode<synchronous>, transform_indices = @transform_3, window_bounds = array<i64: 64, 1>}, {pipeline_mode = #tpu.pipeline_mode<synchronous>, transform_indices = @transform_4, window_bounds = array<i64: 64, 32>}, {pipeline_mode = #tpu.pipeline_mode<synchronous>, transform_indices = @transform_5, window_bounds = array<i64: 32, 1>}, {pipeline_mode = #tpu.pipeline_mode<synchronous>, transform_indices = @transform_6, window_bounds = array<i64: 32, 16>}, {pipeline_mode = #tpu.pipeline_mode<synchronous>, transform_indices = @transform_7, window_bounds = array<i64: 16, 1>}, {pipeline_mode = #tpu.pipeline_mode<synchronous>, transform_indices = @transform_8, window_bounds = array<i64: 16, 1>}, {pipeline_mode = #tpu.pipeline_mode<synchronous>, transform_indices = @transform_9, window_bounds = array<i64: 1, 1>}, {transform_indices = @transform_10, window_bounds = array<i64: 1, 256>}]} {
    %c256_i32 = arith.constant 256 : i32
    %0 = arith.muli %arg0, %c256_i32 : i32
    %c0_i32 = arith.constant 0 : i32
    %c32_i32 = arith.constant 32 : i32
    %1 = arith.addi %c0_i32, %c32_i32 : i32
    %c1_i32 = arith.constant 1 : i32
    scf.for %arg15 = %c0_i32 to %1 step %c1_i32  : i32 {
      %c8_i32 = arith.constant 8 : i32
      %42 = arith.muli %arg15, %c8_i32 : i32
      %43 = tpu.assume_multiple %42, 8 : i32
      %44 = arith.addi %0, %43 : i32
      %c0_i32_29 = arith.constant 0 : i32
      %45 = arith.addi %44, %c0_i32_29 : i32
      %46 = arith.index_cast %45 : i32 to index
      %47 = memref.load %arg1[%46] : memref<256xi32, #tpu.memory_space<smem>>
      %48 = arith.addi %0, %43 : i32
      %c0_i32_30 = arith.constant 0 : i32
      %49 = arith.addi %48, %c0_i32_30 : i32
      %50 = arith.index_cast %49 : i32 to index
      %51 = memref.load %arg2[%50] : memref<256xi32, #tpu.memory_space<smem>>
      %52 = arith.index_cast %47 : i32 to index
      %c0_31 = arith.constant 0 : index
      %53 = vector.load %arg3[%52, %c0_31] : memref<32x64xf32, #tpu.memory_space<vmem>>, vector<1x64xf32>
      %c0_i32_32 = arith.constant 0 : i32
      %54 = arith.addi %43, %c0_i32_32 : i32
      %55 = arith.index_cast %54 : i32 to index
      %c0_33 = arith.constant 0 : index
      %56 = vector.load %arg14[%55, %c0_33] : memref<256x128xf32, #tpu.memory_space<vmem>>, vector<1x64xf32>
      tpu.vector_store %arg14[%55, %c0_33], %53 {strides = array<i32>} : memref<256x128xf32, #tpu.memory_space<vmem>>, vector<1x64xf32>,
      %57 = arith.index_cast %51 : i32 to index
      %c0_34 = arith.constant 0 : index
      %58 = vector.load %arg4[%57, %c0_34] : memref<48x64xf32, #tpu.memory_space<vmem>>, vector<1x64xf32>
      %c0_i32_35 = arith.constant 0 : i32
      %59 = arith.addi %43, %c0_i32_35 : i32
      %60 = arith.index_cast %59 : i32 to index
      %c64 = arith.constant 64 : index
      %61 = vector.load %arg14[%60, %c64] : memref<256x128xf32, #tpu.memory_space<vmem>>, vector<1x64xf32>
      tpu.vector_store %arg14[%60, %c64], %58 {strides = array<i32>} : memref<256x128xf32, #tpu.memory_space<vmem>>, vector<1x64xf32>,
      %62 = arith.addi %0, %43 : i32
      %c1_i32_36 = arith.constant 1 : i32
      %63 = arith.addi %62, %c1_i32_36 : i32
      %64 = arith.index_cast %63 : i32 to index
      %65 = memref.load %arg1[%64] : memref<256xi32, #tpu.memory_space<smem>>
      %66 = arith.addi %0, %43 : i32
      %c1_i32_37 = arith.constant 1 : i32
      %67 = arith.addi %66, %c1_i32_37 : i32
      %68 = arith.index_cast %67 : i32 to index
      %69 = memref.load %arg2[%68] : memref<256xi32, #tpu.memory_space<smem>>
      %70 = arith.index_cast %65 : i32 to index
      %c0_38 = arith.constant 0 : index
      %71 = vector.load %arg3[%70, %c0_38] : memref<32x64xf32, #tpu.memory_space<vmem>>, vector<1x64xf32>
      %c1_i32_39 = arith.constant 1 : i32
      %72 = arith.addi %43, %c1_i32_39 : i32
      %73 = arith.index_cast %72 : i32 to index
      %c0_40 = arith.constant 0 : index
      %74 = vector.load %arg14[%73, %c0_40] : memref<256x128xf32, #tpu.memory_space<vmem>>, vector<1x64xf32>
      tpu.vector_store %arg14[%73, %c0_40], %71 {strides = array<i32>} : memref<256x128xf32, #tpu.memory_space<vmem>>, vector<1x64xf32>,
      %75 = arith.index_cast %69 : i32 to index
      %c0_41 = arith.constant 0 : index
      %76 = vector.load %arg4[%75, %c0_41] : memref<48x64xf32, #tpu.memory_space<vmem>>, vector<1x64xf32>
      %c1_i32_42 = arith.constant 1 : i32
      %77 = arith.addi %43, %c1_i32_42 : i32
      %78 = arith.index_cast %77 : i32 to index
      %c64_43 = arith.constant 64 : index
      %79 = vector.load %arg14[%78, %c64_43] : memref<256x128xf32, #tpu.memory_space<vmem>>, vector<1x64xf32>
      tpu.vector_store %arg14[%78, %c64_43], %76 {strides = array<i32>} : memref<256x128xf32, #tpu.memory_space<vmem>>, vector<1x64xf32>,
      %80 = arith.addi %0, %43 : i32
      %c2_i32 = arith.constant 2 : i32
      %81 = arith.addi %80, %c2_i32 : i32
      %82 = arith.index_cast %81 : i32 to index
      %83 = memref.load %arg1[%82] : memref<256xi32, #tpu.memory_space<smem>>
      %84 = arith.addi %0, %43 : i32
      %c2_i32_44 = arith.constant 2 : i32
      %85 = arith.addi %84, %c2_i32_44 : i32
      %86 = arith.index_cast %85 : i32 to index
      %87 = memref.load %arg2[%86] : memref<256xi32, #tpu.memory_space<smem>>
      %88 = arith.index_cast %83 : i32 to index
      %c0_45 = arith.constant 0 : index
      %89 = vector.load %arg3[%88, %c0_45] : memref<32x64xf32, #tpu.memory_space<vmem>>, vector<1x64xf32>
      %c2_i32_46 = arith.constant 2 : i32
      %90 = arith.addi %43, %c2_i32_46 : i32
      %91 = arith.index_cast %90 : i32 to index
      %c0_47 = arith.constant 0 : index
      %92 = vector.load %arg14[%91, %c0_47] : memref<256x128xf32, #tpu.memory_space<vmem>>, vector<1x64xf32>
      tpu.vector_store %arg14[%91, %c0_47], %89 {strides = array<i32>} : memref<256x128xf32, #tpu.memory_space<vmem>>, vector<1x64xf32>,
      %93 = arith.index_cast %87 : i32 to index
      %c0_48 = arith.constant 0 : index
      %94 = vector.load %arg4[%93, %c0_48] : memref<48x64xf32, #tpu.memory_space<vmem>>, vector<1x64xf32>
      %c2_i32_49 = arith.constant 2 : i32
      %95 = arith.addi %43, %c2_i32_49 : i32
      %96 = arith.index_cast %95 : i32 to index
      %c64_50 = arith.constant 64 : index
      %97 = vector.load %arg14[%96, %c64_50] : memref<256x128xf32, #tpu.memory_space<vmem>>, vector<1x64xf32>
      tpu.vector_store %arg14[%96, %c64_50], %94 {strides = array<i32>} : memref<256x128xf32, #tpu.memory_space<vmem>>, vector<1x64xf32>,
      %98 = arith.addi %0, %43 : i32
      %c3_i32 = arith.constant 3 : i32
      %99 = arith.addi %98, %c3_i32 : i32
      %100 = arith.index_cast %99 : i32 to index
      %101 = memref.load %arg1[%100] : memref<256xi32, #tpu.memory_space<smem>>
      %102 = arith.addi %0, %43 : i32
      %c3_i32_51 = arith.constant 3 : i32
      %103 = arith.addi %102, %c3_i32_51 : i32
      %104 = arith.index_cast %103 : i32 to index
      %105 = memref.load %arg2[%104] : memref<256xi32, #tpu.memory_space<smem>>
      %106 = arith.index_cast %101 : i32 to index
      %c0_52 = arith.constant 0 : index
      %107 = vector.load %arg3[%106, %c0_52] : memref<32x64xf32, #tpu.memory_space<vmem>>, vector<1x64xf32>
      %c3_i32_53 = arith.constant 3 : i32
      %108 = arith.addi %43, %c3_i32_53 : i32
      %109 = arith.index_cast %108 : i32 to index
      %c0_54 = arith.constant 0 : index
      %110 = vector.load %arg14[%109, %c0_54] : memref<256x128xf32, #tpu.memory_space<vmem>>, vector<1x64xf32>
      tpu.vector_store %arg14[%109, %c0_54], %107 {strides = array<i32>} : memref<256x128xf32, #tpu.memory_space<vmem>>, vector<1x64xf32>,
      %111 = arith.index_cast %105 : i32 to index
      %c0_55 = arith.constant 0 : index
      %112 = vector.load %arg4[%111, %c0_55] : memref<48x64xf32, #tpu.memory_space<vmem>>, vector<1x64xf32>
      %c3_i32_56 = arith.constant 3 : i32
      %113 = arith.addi %43, %c3_i32_56 : i32
      %114 = arith.index_cast %113 : i32 to index
      %c64_57 = arith.constant 64 : index
      %115 = vector.load %arg14[%114, %c64_57] : memref<256x128xf32, #tpu.memory_space<vmem>>, vector<1x64xf32>
      tpu.vector_store %arg14[%114, %c64_57], %112 {strides = array<i32>} : memref<256x128xf32, #tpu.memory_space<vmem>>, vector<1x64xf32>,
      %116 = arith.addi %0, %43 : i32
      %c4_i32 = arith.constant 4 : i32
      %117 = arith.addi %116, %c4_i32 : i32
      %118 = arith.index_cast %117 : i32 to index
      %119 = memref.load %arg1[%118] : memref<256xi32, #tpu.memory_space<smem>>
      %120 = arith.addi %0, %43 : i32
      %c4_i32_58 = arith.constant 4 : i32
      %121 = arith.addi %120, %c4_i32_58 : i32
      %122 = arith.index_cast %121 : i32 to index
      %123 = memref.load %arg2[%122] : memref<256xi32, #tpu.memory_space<smem>>
      %124 = arith.index_cast %119 : i32 to index
      %c0_59 = arith.constant 0 : index
      %125 = vector.load %arg3[%124, %c0_59] : memref<32x64xf32, #tpu.memory_space<vmem>>, vector<1x64xf32>
      %c4_i32_60 = arith.constant 4 : i32
      %126 = arith.addi %43, %c4_i32_60 : i32
      %127 = arith.index_cast %126 : i32 to index
      %c0_61 = arith.constant 0 : index
      %128 = vector.load %arg14[%127, %c0_61] : memref<256x128xf32, #tpu.memory_space<vmem>>, vector<1x64xf32>
      tpu.vector_store %arg14[%127, %c0_61], %125 {strides = array<i32>} : memref<256x128xf32, #tpu.memory_space<vmem>>, vector<1x64xf32>,
      %129 = arith.index_cast %123 : i32 to index
      %c0_62 = arith.constant 0 : index
      %130 = vector.load %arg4[%129, %c0_62] : memref<48x64xf32, #tpu.memory_space<vmem>>, vector<1x64xf32>
      %c4_i32_63 = arith.constant 4 : i32
      %131 = arith.addi %43, %c4_i32_63 : i32
      %132 = arith.index_cast %131 : i32 to index
      %c64_64 = arith.constant 64 : index
      %133 = vector.load %arg14[%132, %c64_64] : memref<256x128xf32, #tpu.memory_space<vmem>>, vector<1x64xf32>
      tpu.vector_store %arg14[%132, %c64_64], %130 {strides = array<i32>} : memref<256x128xf32, #tpu.memory_space<vmem>>, vector<1x64xf32>,
      %134 = arith.addi %0, %43 : i32
      %c5_i32 = arith.constant 5 : i32
      %135 = arith.addi %134, %c5_i32 : i32
      %136 = arith.index_cast %135 : i32 to index
      %137 = memref.load %arg1[%136] : memref<256xi32, #tpu.memory_space<smem>>
      %138 = arith.addi %0, %43 : i32
      %c5_i32_65 = arith.constant 5 : i32
      %139 = arith.addi %138, %c5_i32_65 : i32
      %140 = arith.index_cast %139 : i32 to index
      %141 = memref.load %arg2[%140] : memref<256xi32, #tpu.memory_space<smem>>
      %142 = arith.index_cast %137 : i32 to index
      %c0_66 = arith.constant 0 : index
      %143 = vector.load %arg3[%142, %c0_66] : memref<32x64xf32, #tpu.memory_space<vmem>>, vector<1x64xf32>
      %c5_i32_67 = arith.constant 5 : i32
      %144 = arith.addi %43, %c5_i32_67 : i32
      %145 = arith.index_cast %144 : i32 to index
      %c0_68 = arith.constant 0 : index
      %146 = vector.load %arg14[%145, %c0_68] : memref<256x128xf32, #tpu.memory_space<vmem>>, vector<1x64xf32>
      tpu.vector_store %arg14[%145, %c0_68], %143 {strides = array<i32>} : memref<256x128xf32, #tpu.memory_space<vmem>>, vector<1x64xf32>,
      %147 = arith.index_cast %141 : i32 to index
      %c0_69 = arith.constant 0 : index
      %148 = vector.load %arg4[%147, %c0_69] : memref<48x64xf32, #tpu.memory_space<vmem>>, vector<1x64xf32>
      %c5_i32_70 = arith.constant 5 : i32
      %149 = arith.addi %43, %c5_i32_70 : i32
      %150 = arith.index_cast %149 : i32 to index
      %c64_71 = arith.constant 64 : index
      %151 = vector.load %arg14[%150, %c64_71] : memref<256x128xf32, #tpu.memory_space<vmem>>, vector<1x64xf32>
      tpu.vector_store %arg14[%150, %c64_71], %148 {strides = array<i32>} : memref<256x128xf32, #tpu.memory_space<vmem>>, vector<1x64xf32>,
      %152 = arith.addi %0, %43 : i32
      %c6_i32 = arith.constant 6 : i32
      %153 = arith.addi %152, %c6_i32 : i32
      %154 = arith.index_cast %153 : i32 to index
      %155 = memref.load %arg1[%154] : memref<256xi32, #tpu.memory_space<smem>>
      %156 = arith.addi %0, %43 : i32
      %c6_i32_72 = arith.constant 6 : i32
      %157 = arith.addi %156, %c6_i32_72 : i32
      %158 = arith.index_cast %157 : i32 to index
      %159 = memref.load %arg2[%158] : memref<256xi32, #tpu.memory_space<smem>>
      %160 = arith.index_cast %155 : i32 to index
      %c0_73 = arith.constant 0 : index
      %161 = vector.load %arg3[%160, %c0_73] : memref<32x64xf32, #tpu.memory_space<vmem>>, vector<1x64xf32>
      %c6_i32_74 = arith.constant 6 : i32
      %162 = arith.addi %43, %c6_i32_74 : i32
      %163 = arith.index_cast %162 : i32 to index
      %c0_75 = arith.constant 0 : index
      %164 = vector.load %arg14[%163, %c0_75] : memref<256x128xf32, #tpu.memory_space<vmem>>, vector<1x64xf32>
      tpu.vector_store %arg14[%163, %c0_75], %161 {strides = array<i32>} : memref<256x128xf32, #tpu.memory_space<vmem>>, vector<1x64xf32>,
      %165 = arith.index_cast %159 : i32 to index
      %c0_76 = arith.constant 0 : index
      %166 = vector.load %arg4[%165, %c0_76] : memref<48x64xf32, #tpu.memory_space<vmem>>, vector<1x64xf32>
      %c6_i32_77 = arith.constant 6 : i32
      %167 = arith.addi %43, %c6_i32_77 : i32
      %168 = arith.index_cast %167 : i32 to index
      %c64_78 = arith.constant 64 : index
      %169 = vector.load %arg14[%168, %c64_78] : memref<256x128xf32, #tpu.memory_space<vmem>>, vector<1x64xf32>
      tpu.vector_store %arg14[%168, %c64_78], %166 {strides = array<i32>} : memref<256x128xf32, #tpu.memory_space<vmem>>, vector<1x64xf32>,
      %170 = arith.addi %0, %43 : i32
      %c7_i32 = arith.constant 7 : i32
      %171 = arith.addi %170, %c7_i32 : i32
      %172 = arith.index_cast %171 : i32 to index
      %173 = memref.load %arg1[%172] : memref<256xi32, #tpu.memory_space<smem>>
      %174 = arith.addi %0, %43 : i32
      %c7_i32_79 = arith.constant 7 : i32
      %175 = arith.addi %174, %c7_i32_79 : i32
      %176 = arith.index_cast %175 : i32 to index
      %177 = memref.load %arg2[%176] : memref<256xi32, #tpu.memory_space<smem>>
      %178 = arith.index_cast %173 : i32 to index
      %c0_80 = arith.constant 0 : index
      %179 = vector.load %arg3[%178, %c0_80] : memref<32x64xf32, #tpu.memory_space<vmem>>, vector<1x64xf32>
      %c7_i32_81 = arith.constant 7 : i32
      %180 = arith.addi %43, %c7_i32_81 : i32
      %181 = arith.index_cast %180 : i32 to index
      %c0_82 = arith.constant 0 : index
      %182 = vector.load %arg14[%181, %c0_82] : memref<256x128xf32, #tpu.memory_space<vmem>>, vector<1x64xf32>
      tpu.vector_store %arg14[%181, %c0_82], %179 {strides = array<i32>} : memref<256x128xf32, #tpu.memory_space<vmem>>, vector<1x64xf32>,
      %183 = arith.index_cast %177 : i32 to index
      %c0_83 = arith.constant 0 : index
      %184 = vector.load %arg4[%183, %c0_83] : memref<48x64xf32, #tpu.memory_space<vmem>>, vector<1x64xf32>
      %c7_i32_84 = arith.constant 7 : i32
      %185 = arith.addi %43, %c7_i32_84 : i32
      %186 = arith.index_cast %185 : i32 to index
      %c64_85 = arith.constant 64 : index
      %187 = vector.load %arg14[%186, %c64_85] : memref<256x128xf32, #tpu.memory_space<vmem>>, vector<1x64xf32>
      tpu.vector_store %arg14[%186, %c64_85], %184 {strides = array<i32>} : memref<256x128xf32, #tpu.memory_space<vmem>>, vector<1x64xf32>,
    }
    %c32_i32_0 = arith.constant 32 : i32
    %c0 = arith.constant 0 : index
    %c0_1 = arith.constant 0 : index
    %2 = vector.load %arg14[%c0, %c0_1] : memref<256x128xf32, #tpu.memory_space<vmem>>, vector<256x128xf32>
    %c0_2 = arith.constant 0 : index
    %c0_3 = arith.constant 0 : index
    %3 = vector.load %arg5[%c0_2, %c0_3] : memref<128x64xf32, #tpu.memory_space<vmem>>, vector<128x64xf32>
    %c0_4 = arith.constant 0 : index
    %c0_5 = arith.constant 0 : index
    %4 = vector.load %arg6[%c0_4, %c0_5] : memref<64x1xf32, #tpu.memory_space<vmem>>, vector<64x1xf32>
    %c0_6 = arith.constant 0 : index
    %c0_7 = arith.constant 0 : index
    %5 = vector.load %arg7[%c0_6, %c0_7] : memref<64x32xf32, #tpu.memory_space<vmem>>, vector<64x32xf32>
    %c0_8 = arith.constant 0 : index
    %c0_9 = arith.constant 0 : index
    %6 = vector.load %arg8[%c0_8, %c0_9] : memref<32x1xf32, #tpu.memory_space<vmem>>, vector<32x1xf32>
    %c0_10 = arith.constant 0 : index
    %c0_11 = arith.constant 0 : index
    %7 = vector.load %arg9[%c0_10, %c0_11] : memref<32x16xf32, #tpu.memory_space<vmem>>, vector<32x16xf32>
    %c0_12 = arith.constant 0 : index
    %c0_13 = arith.constant 0 : index
    %8 = vector.load %arg10[%c0_12, %c0_13] : memref<16x1xf32, #tpu.memory_space<vmem>>, vector<16x1xf32>
    %c0_14 = arith.constant 0 : index
    %c0_15 = arith.constant 0 : index
    %9 = vector.load %arg11[%c0_14, %c0_15] : memref<16x1xf32, #tpu.memory_space<vmem>>, vector<16x1xf32>
    %c0_16 = arith.constant 0 : index
    %c0_17 = arith.constant 0 : index
    %10 = vector.load %arg12[%c0_16, %c0_17] : memref<1x1xf32, #tpu.memory_space<vmem>>, vector<1x1xf32>
    %cst = arith.constant dense<0.000000e+00> : vector<64x256xf32>
    %11 = tpu.matmul %3, %2, %cst {dimension_numbers = #tpu.dot_dimension_numbers<[0], [1], [1], [0], [0, 1, 1, 0], [], []>} : vector<128x64xf32>, vector<256x128xf32>, vector<64x256xf32> -> vector<64x256xf32>
    %12 = vector.broadcast %4 : vector<64x1xf32> to vector<64x256xf32>
    %13 = arith.addf %11, %12 : vector<64x256xf32>
    %cst_18 = arith.constant 0.000000e+00 : f32
    %14 = vector.broadcast %cst_18 : f32 to vector<64x256xf32>
    %15 = arith.maximumf %13, %14 : vector<64x256xf32>
    %cst_19 = arith.constant dense<0.000000e+00> : vector<32x256xf32>
    %16 = tpu.matmul %5, %15, %cst_19 {dimension_numbers = #tpu.dot_dimension_numbers<[0], [0], [1], [1], [0, 1, 1, 1], [], []>} : vector<64x32xf32>, vector<64x256xf32>, vector<32x256xf32> -> vector<32x256xf32>
    %17 = vector.broadcast %6 : vector<32x1xf32> to vector<32x256xf32>
    %18 = arith.addf %16, %17 : vector<32x256xf32>
    %cst_20 = arith.constant 0.000000e+00 : f32
    %19 = vector.broadcast %cst_20 : f32 to vector<32x256xf32>
    %20 = arith.maximumf %18, %19 : vector<32x256xf32>
    %cst_21 = arith.constant dense<0.000000e+00> : vector<16x256xf32>
    %21 = tpu.matmul %7, %20, %cst_21 {dimension_numbers = #tpu.dot_dimension_numbers<[0], [0], [1], [1], [0, 1, 1, 1], [], []>} : vector<32x16xf32>, vector<32x256xf32>, vector<16x256xf32> -> vector<16x256xf32>
    %22 = vector.broadcast %8 : vector<16x1xf32> to vector<16x256xf32>
    %23 = arith.addf %21, %22 : vector<16x256xf32>
    %cst_22 = arith.constant 0.000000e+00 : f32
    %24 = vector.broadcast %cst_22 : f32 to vector<16x256xf32>
    %25 = arith.maximumf %23, %24 : vector<16x256xf32>
    %26 = vector.broadcast %9 : vector<16x1xf32> to vector<16x256xf32>
    %27 = arith.mulf %26, %25 : vector<16x256xf32>
    %cst_23 = arith.constant dense<0.000000e+00> : vector<256xf32>
    %28 = vector.multi_reduction <add>, %27, %cst_23 [0] : vector<16x256xf32> to vector<256xf32>
    %29 = vector.shape_cast %28 : vector<256xf32> to vector<1x256xf32>
    %30 = vector.broadcast %10 : vector<1x1xf32> to vector<1x256xf32>
    %31 = arith.addf %29, %30 : vector<1x256xf32>
    %32 = arith.negf %31 : vector<1x256xf32>
    %33 = math.exp %32 : vector<1x256xf32>
    %cst_24 = arith.constant 1.000000e+00 : f32
    %34 = vector.broadcast %cst_24 : f32 to vector<1x256xf32>
    %35 = arith.addf %34, %33 : vector<1x256xf32>
    %36 = arith.divf %34, %35 : vector<1x256xf32>
    %cst_25 = arith.constant 4.000000e+00 : f32
    %37 = vector.broadcast %cst_25 : f32 to vector<1x256xf32>
    %38 = arith.mulf %36, %37 : vector<1x256xf32>
    %cst_26 = arith.constant 1.000000e+00 : f32
    %39 = vector.broadcast %cst_26 : f32 to vector<1x256xf32>
    %40 = arith.addf %38, %39 : vector<1x256xf32>
    %c0_27 = arith.constant 0 : index
    %c0_28 = arith.constant 0 : index
    %41 = vector.load %arg13[%c0_27, %c0_28] : memref<1x256xf32, #tpu.memory_space<vmem>>, vector<1x256xf32>
    tpu.vector_store %arg13[%c0_27, %c0_28], %40 {strides = array<i32>} : memref<1x256xf32, #tpu.memory_space<vmem>>, vector<1x256xf32>,
    return
  }
  func.func @transform_0(%arg0: i32, %arg1: memref<256xi32, #tpu.memory_space<smem>>, %arg2: memref<256xi32, #tpu.memory_space<smem>>) -> (i32, i32) {
    %c0_i32 = arith.constant 0 : i32
    %c0_i32_0 = arith.constant 0 : i32
    %c0_i32_1 = arith.constant 0 : i32
    return %c0_i32, %c0_i32_0 : i32, i32
  }
  func.func @transform_1(%arg0: i32, %arg1: memref<256xi32, #tpu.memory_space<smem>>, %arg2: memref<256xi32, #tpu.memory_space<smem>>) -> (i32, i32) {
    %c0_i32 = arith.constant 0 : i32
    %c0_i32_0 = arith.constant 0 : i32
    %c0_i32_1 = arith.constant 0 : i32
    return %c0_i32, %c0_i32_0 : i32, i32
  }
  func.func @transform_2(%arg0: i32, %arg1: memref<256xi32, #tpu.memory_space<smem>>, %arg2: memref<256xi32, #tpu.memory_space<smem>>) -> (i32, i32) {
    %c0_i32 = arith.constant 0 : i32
    %c0_i32_0 = arith.constant 0 : i32
    %c0_i32_1 = arith.constant 0 : i32
    return %c0_i32, %c0_i32_0 : i32, i32
  }
  func.func @transform_3(%arg0: i32, %arg1: memref<256xi32, #tpu.memory_space<smem>>, %arg2: memref<256xi32, #tpu.memory_space<smem>>) -> (i32, i32) {
    %c0_i32 = arith.constant 0 : i32
    %c0_i32_0 = arith.constant 0 : i32
    %c0_i32_1 = arith.constant 0 : i32
    return %c0_i32, %c0_i32_0 : i32, i32
  }
  func.func @transform_4(%arg0: i32, %arg1: memref<256xi32, #tpu.memory_space<smem>>, %arg2: memref<256xi32, #tpu.memory_space<smem>>) -> (i32, i32) {
    %c0_i32 = arith.constant 0 : i32
    %c0_i32_0 = arith.constant 0 : i32
    %c0_i32_1 = arith.constant 0 : i32
    return %c0_i32, %c0_i32_0 : i32, i32
  }
  func.func @transform_5(%arg0: i32, %arg1: memref<256xi32, #tpu.memory_space<smem>>, %arg2: memref<256xi32, #tpu.memory_space<smem>>) -> (i32, i32) {
    %c0_i32 = arith.constant 0 : i32
    %c0_i32_0 = arith.constant 0 : i32
    %c0_i32_1 = arith.constant 0 : i32
    return %c0_i32, %c0_i32_0 : i32, i32
  }
  func.func @transform_6(%arg0: i32, %arg1: memref<256xi32, #tpu.memory_space<smem>>, %arg2: memref<256xi32, #tpu.memory_space<smem>>) -> (i32, i32) {
    %c0_i32 = arith.constant 0 : i32
    %c0_i32_0 = arith.constant 0 : i32
    %c0_i32_1 = arith.constant 0 : i32
    return %c0_i32, %c0_i32_0 : i32, i32
  }
  func.func @transform_7(%arg0: i32, %arg1: memref<256xi32, #tpu.memory_space<smem>>, %arg2: memref<256xi32, #tpu.memory_space<smem>>) -> (i32, i32) {
    %c0_i32 = arith.constant 0 : i32
    %c0_i32_0 = arith.constant 0 : i32
    %c0_i32_1 = arith.constant 0 : i32
    return %c0_i32, %c0_i32_0 : i32, i32
  }
  func.func @transform_8(%arg0: i32, %arg1: memref<256xi32, #tpu.memory_space<smem>>, %arg2: memref<256xi32, #tpu.memory_space<smem>>) -> (i32, i32) {
    %c0_i32 = arith.constant 0 : i32
    %c0_i32_0 = arith.constant 0 : i32
    %c0_i32_1 = arith.constant 0 : i32
    return %c0_i32, %c0_i32_0 : i32, i32
  }
  func.func @transform_9(%arg0: i32, %arg1: memref<256xi32, #tpu.memory_space<smem>>, %arg2: memref<256xi32, #tpu.memory_space<smem>>) -> (i32, i32) {
    %c0_i32 = arith.constant 0 : i32
    %c0_i32_0 = arith.constant 0 : i32
    %c0_i32_1 = arith.constant 0 : i32
    return %c0_i32, %c0_i32_0 : i32, i32
  }
  func.func @transform_10(%arg0: i32, %arg1: memref<256xi32, #tpu.memory_space<smem>>, %arg2: memref<256xi32, #tpu.memory_space<smem>>) -> (i32, i32) {
    %c0_i32 = arith.constant 0 : i32
    %c0_i32_0 = arith.constant 0 : i32
    return %c0_i32, %arg0 : i32, i32
  }
}

</mosaic_0001>

<bundles_post_ra>
// kernel: tpu_custom_call.1
= control target key start
LH: loop header
LB: loop body
LE: loop exit
PB: predicated region body
PF: predicated region fallthrough
CT: control target
= control target key end

     0   :  { %s1387_s0 = inlined_call_operand.vmem [shape: s32[256], index: 0, kind: input, shape index: {}]   ;;  %s1388_s2 = inlined_call_operand.vmem [shape: f32[32,64], index: 2, kind: input, shape index: {}]   ;;  %s1389_s3 = inlined_call_operand.vmem [shape: f32[48,64], index: 3, kind: input, shape index: {}]   ;;  %s1390_s4 = inlined_call_operand.vmem [shape: f32[128,64], index: 4, kind: input, shape index: {}]   ;;  %s1391_s5 = inlined_call_operand.vmem [shape: f32[64,1], index: 5, kind: input, shape index: {}]   ;;  %s1392_s6 = inlined_call_operand.vmem [shape: f32[64,32], index: 6, kind: input, shape index: {}]   ;;  %s1393_s7 = inlined_call_operand.vmem [shape: f32[32,1], index: 7, kind: input, shape index: {}]   ;;  %s1394_s8 = inlined_call_operand.vmem [shape: f32[32,16], index: 8, kind: input, shape index: {}]   ;;  %s1395_s9 = inlined_call_operand.vmem [shape: f32[16,1], index: 9, kind: input, shape index: {}]   ;;  %s1396_s10 = inlined_call_operand.vmem [shape: f32[16,1], index: 10, kind: input, shape index: {}]   ;;  %s1397_s12 = inlined_call_operand.hbm [shape: f32[1,256], index: 12, kind: output, shape index: {}]   ;;  %s1398_s1 = inlined_call_operand.vmem [shape: s32[256], index: 1, kind: input, shape index: {}]   ;;  %s1399_s11 = inlined_call_operand.<no memory space> [shape: f32[1,1], index: 11, kind: input, shape index: {}]  }
   0x1   :  { %1402 = sst [smem:[#allocation11_spill]] %s1394_s8  ;;  %s17_s23 = sshll.u32 %s1387_s0, 4  ;;  %v25_v0 = vstv %s1399_s11  ;;  %s18_s23 = int_to_ptr.vmem [resolvable:$true] %s17_s23 }
   0x2   :  { %1403 = sst [smem:[#allocation12_spill]] %s1396_s10  ;;  %s21_s26 = sshll.u32 %s1398_s1, 4  ;;  %26 = vst [vmem:[#allocation6] sm:$0x1] %v25_v0  ;;  %s22_s26 = int_to_ptr.vmem [resolvable:$true] %s21_s26 }
   0x3   :  { %1404 = sst [smem:[#allocation13_spill]] %s1397_s12  ;;  %s988_s29 = scalar_lea.vmem %s18_s23, 32 }
   0x4   :  { %p989_p0 = scmp.ne.s32.totalorder %s18_s23, %s988_s29  ;;  %p993_p1 = scmp.lt.s32.totalorder %s18_s23, %s18_s23 }
   0x5   :  { %p994_p2 = scmp.lt.s32.totalorder %s988_s29, %s988_s29 }
   0x7   :  { %p995_p3 = por %p994_p2, %p993_p1 }
   0x9   :  { %p996_p4 = pnand %p995_p3, %p989_p0 }
   0xb   :  { %999 = shalt.err (!%p996_p4)  }
   0xc   :  { %s1044_s30 = smov [#allocation4]   ;;  %s1000_s0 = scalar_lea.vmem %s22_s26, 32 }
   0xd   :  { %20 = dma.vmem_to_smem %s18_s23, 32, %s1044_s30, [#allocation3] }
   0xe   :  { %p1001_p5 = scmp.ne.s32.totalorder %s22_s26, %s1000_s0  ;;  %p1005_p6 = scmp.lt.s32.totalorder %s22_s26, %s22_s26 }
   0xf   :  { %p1006_p7 = scmp.lt.s32.totalorder %s1000_s0, %s1000_s0 }
  0x11   :  { %p1007_p8 = por %p1006_p7, %p1005_p6 }
  0x13   :  { %p1008_p9 = pnand %p1007_p8, %p1001_p5 }
  0x15   :  { %1011 = shalt.err (!%p1008_p9)  }
  0x16   :  { %s1045_s1 = smov [#allocation5]  }
  0x17   :  { %24 = dma.vmem_to_smem %s22_s26, 32, %s1045_s1, [#allocation3] }
  0x18   :  { %1036 = dma.done.wait [#allocation3], 64 }
  0x19   :  { %1037 = vsyncadd [#allocation3], 4294967232 }
  0x1a   :  { %28 = sfence }
  0x1b   :  { %29 = vsyncpa [#allocation8], 0  ;;  %s1125_s11 = smov 0  }
  0x1c LB: > { %s1131_s13 = sshll.u32 %s1042_s11, 3  ;;  %vm64_vm0 = vcmask 516096   ;;  %s1046_s8 = smov 64   ;;  %vm72_vm1 = vcmask 1040896   ;;  %s1042_s11 = sphi %s1125_s11, %s56_s11  }
  0x1d   : > { %s89_s14 = sadd.s32 2, %s1131_s13  ;;  %s104_s16 = sadd.s32 3, %s1131_s13 }
  0x1e   : > { %s91_s15 = sld [smem:[#allocation5 + %s89_s14]]  ;;  %s74_s18 = sadd.s32 1, %s1131_s13 }
  0x1f   : > { %s90_s17 = sld [smem:[#allocation4 + %s89_s14]]  ;;  %s134_s20 = sadd.s32 5, %s1131_s13 }
  0x20   : > { %s60_s19 = sld [smem:[#allocation5 + %s1131_s13]]  ;;  %s119_s22 = sadd.s32 4, %s1131_s13 }
  0x21   : > { %s105_s21 = sld [smem:[#allocation4 + %s104_s16]]  ;;  %s1405_s1 = sadd.s32 7, %s1131_s13 }
  0x22   : > { %s106_s23 = sld [smem:[#allocation5 + %s104_s16]]  ;;  %s56_s11 = sadd.s32 1, %s1042_s11  }
  0x23   : > { %s75_s25 = sld [smem:[#allocation4 + %s74_s18]]  ;;  %p53_p10 = scmp.ge.s32.totalorder %s56_s11, 32  }
  0x24   : > { %s97_s29 = scalar_lea.vmem %s1389_s3, %s91_s15  ;;  %s76_s30 = sld [smem:[#allocation5 + %s74_s18]]  ;;  %v211_v25 = vld [vmem:[%s1390_s4] sm:$0xff] (%p53_p10)  ;;  %v1047_v26 = vmov (%p53_p10), 0   ;;  %v212_v27 = vld [vmem:[%s1390_s4 + $0x8] sm:$0xff] (%p53_p10)  ;;  %v234_v28 = vld [vmem:[%s1391_s5 + $0x38] sm:$0xff] (%p53_p10)  ;;  %vm509_vm2 = vcmask (%p53_p10), 523264  }
  0x25   : > { %v98_v1 = vld [vmem:[%s97_s29] sm:$0x1]  ;;  %s92_s14 = scalar_lea.vmem %s1388_s2, %s90_s17  ;;  %s135_s12 = sld [smem:[#allocation4 + %s134_s20]]  ;;  %978 = vset.pattern.permute.xlu1 (%p53_p10), %v1047_v26  ;;  %v233_v29 = vld [vmem:[%s1391_s5 + $0x30] sm:$0xff] (%p53_p10)  ;;  %v232_v31 = vld [vmem:[%s1391_s5 + $0x28] sm:$0xff] (%p53_p10)  ;;  %vm661_vm3 = vcmask (%p53_p10), 261120  }
  0x26   : > { %100 = vrot.lane.b32.xlu1 %v98_v1, %s1046_s8  ;;  %v93_v2 = vld [vmem:[%s92_s14] sm:$0x1]  ;;  %s66_s26 = scalar_lea.vmem %s1389_s3, %s60_s19  ;;  %s136_s10 = sld [smem:[#allocation5 + %s134_s20]]  ;;  %v213_v30 = vld [vmem:[%s1390_s4 + $0x10] sm:$0xff] (%p53_p10)  ;;  %v214_v35 = vld [vmem:[%s1390_s4 + $0x18] sm:$0xff] (%p53_p10) }
  0x27   : > { %v67_v3 = vld [vmem:[%s66_s26] sm:$0x1]  ;;  %s107_s27 = scalar_lea.vmem %s1388_s2, %s105_s21  ;;  %s120_s28 = sld [smem:[#allocation4 + %s119_s22]]  ;;  %v230_v41 = vld [vmem:[%s1391_s5 + $0x18] sm:$0xff] (%p53_p10)  ;;  %v216_v43 = vld [vmem:[%s1390_s4 + $0x28] sm:$0xff] (%p53_p10) }
  0x28   : > { %s1155_s29 = scalar_lea.vmem [#allocation2], %s1131_s13  ;;  %69 = vrot.lane.b32.xlu0 %v67_v3, %s1046_s8  ;;  %v108_v4 = vld [vmem:[%s107_s27] sm:$0x1]  ;;  %s112_s20 = scalar_lea.vmem %s1389_s3, %s106_s23  ;;  %v229_v45 = vld [vmem:[%s1391_s5 + $0x10] sm:$0xff] (%p53_p10)  ;;  %v228_v49 = vld [vmem:[%s1391_s5 + $0x8] sm:$0xff] (%p53_p10) }
  0x29   : > { %890 = vst.msk [vmem:[%s1155_s29 + $0x2] sm:$0x1] %vm64_vm0, %v93_v2  ;;  %s121_s24 = sld [smem:[#allocation5 + %s119_s22]]  ;;  %v113_v5 = vld [vmem:[%s112_s20] sm:$0x1]  ;;  %s77_s0 = scalar_lea.vmem %s1388_s2, %s75_s25  ;;  %v217_v47 = vld [vmem:[%s1390_s4 + $0x30] sm:$0xff] (%p53_p10) }
  0x2a   : > { %s165_s14 = sld [smem:[#allocation4 + %s1405_s1]]  ;;  %893 = vst.msk [vmem:[%s1155_s29 + $0x3] sm:$0x1] %vm64_vm0, %v108_v4  ;;  %115 = vrot.lane.b32.xlu1 %v113_v5, %s1046_s8  ;;  %v78_v6 = vld [vmem:[%s77_s0] sm:$0x1]  ;;  %s82_s23 = scalar_lea.vmem %s1389_s3, %s76_s30  ;;  %v218_v51 = vld [vmem:[%s1390_s4 + $0x38] sm:$0xff] (%p53_p10) }
  0x2b   : > { %s1406_s22 = smov %s1405_s1  ;;  %v83_v7 = vld [vmem:[%s82_s23] sm:$0x1]  ;;  %s137_s25 = scalar_lea.vmem %s1388_s2, %s135_s12  ;;  %887 = vst.msk [vmem:[%s1155_s29 + $0x1] sm:$0x1] %vm64_vm0, %v78_v6  ;;  %v220_v58 = vld [vmem:[%s1390_s4 + $0x48] sm:$0xff] (%p53_p10)  ;;  %v221_v61 = vld [vmem:[%s1390_s4 + $0x50] sm:$0xff] (%p53_p10) }
  0x2c   : > { %s166_s18 = sld [smem:[#allocation5 + %s1406_s22]]  ;;  %s1407_s19 = sadd.s32 6, %s1131_s13  ;;  %85 = vrot.lane.b32.xlu0 %v83_v7, %s1046_s8  ;;  %v138_v8 = vld [vmem:[%s137_s25] sm:$0x1]  ;;  %v222_v0 = vld [vmem:[%s1390_s4 + $0x58] sm:$0xff] (%p53_p10)  ;;  %v224_v6 = vld [vmem:[%s1390_s4 + $0x68] sm:$0xff] (%p53_p10) }
  0x2d   : > { %s150_s20 = sld [smem:[#allocation4 + %s1407_s19]]  ;;  %s142_s0 = scalar_lea.vmem %s1389_s3, %s136_s10  ;;  %899 = vst.msk [vmem:[%s1155_s29 + $0x5] sm:$0x1] %vm64_vm0, %v138_v8  ;;  %v231_v37 = vld [vmem:[%s1391_s5 + $0x20] sm:$0xff] (%p53_p10) }
  0x2e   : > { %s1408_s30 = smov %s1407_s19  ;;  %v143_v9 = vld [vmem:[%s142_s0] sm:$0x1]  ;;  %s122_s12 = scalar_lea.vmem %s1388_s2, %s120_s28 }
  0x2f   : > { %s151_s1 = sld [smem:[#allocation5 + %s1408_s30]]  ;;  %145 = vrot.lane.b32.xlu1 %v143_v9, %s1046_s8  ;;  %v123_v10 = vld [vmem:[%s122_s12] sm:$0x1]  ;;  %s127_s17 = scalar_lea.vmem %s1389_s3, %s121_s24  ;;  %v225_v9 = vld [vmem:[%s1390_s4 + $0x70] sm:$0xff] (%p53_p10) }
  0x30   : > { %s59_s23 = sld [smem:[#allocation4 + %s1131_s13]]  ;;  %v128_v11 = vld [vmem:[%s127_s17] sm:$0x1]  ;;  %s167_s19 = scalar_lea.vmem %s1388_s2, %s165_s14  ;;  %896 = vst.msk [vmem:[%s1155_s29 + $0x4] sm:$0x1] %vm64_vm0, %v123_v10 }
  0x31   : > { %130 = vrot.lane.b32.xlu0 %v128_v11, %s1046_s8  ;;  %v168_v12 = vld [vmem:[%s167_s19] sm:$0x1] }
  0x32   : > { %s172_s21 = scalar_lea.vmem %s1389_s3, %s166_s18  ;;  %905 = vst.msk [vmem:[%s1155_s29 + $0x7] sm:$0x1] %vm64_vm0, %v168_v12  ;;  %v215_v39 = vld [vmem:[%s1390_s4 + $0x20] sm:$0xff] (%p53_p10)  ;;  %v226_v12 = vld [vmem:[%s1390_s4 + $0x78] sm:$0xff] (%p53_p10) }
  0x33   : > { %v173_v13 = vld [vmem:[%s172_s21] sm:$0x1]  ;;  %s152_s24 = scalar_lea.vmem %s1388_s2, %s150_s20  ;;  %s1409_s21 = sld [smem:[#allocation12_spill]] (%p53_p10) }
  0x34   : > { %175 = vrot.lane.b32.xlu1 %v173_v13, %s1046_s8  ;;  %v153_v14 = vld [vmem:[%s152_s24] sm:$0x1] }
  0x35   : > { %s157_s16 = scalar_lea.vmem %s1389_s3, %s151_s1  ;;  %902 = vst.msk [vmem:[%s1155_s29 + $0x6] sm:$0x1] %vm64_vm0, %v153_v14  ;;  %v227_v53 = vld [vmem:[%s1391_s5] sm:$0xff] (%p53_p10) }
  0x36   : > { %v158_v15 = vld [vmem:[%s157_s16] sm:$0x1]  ;;  %s61_s12 = scalar_lea.vmem %s1388_s2, %s59_s23 }
  0x37   : > { %160 = vrot.lane.b32.xlu0 %v158_v15, %s1046_s8  ;;  %v62_v16 = vld [vmem:[%s61_s12] sm:$0x1]  ;;  %s1410_s12 = sld [smem:[#allocation11_spill]] (%p53_p10) }
  0x38   : > { %65 = vst.msk [vmem:[%s1155_s29] sm:$0x1] %vm64_vm0, %v62_v16  ;;  %293 = vperm.xlu1 (%p53_p10), %978, %v234_v28   ;;  %v219_v55 = vld [vmem:[%s1390_s4 + $0x40] sm:$0xff] (%p53_p10)  ;;  %v245_v28 = vld [vmem:[%s1393_s7 + $0x10] sm:$0xff] (%p53_p10) }
  0x39   :  { %v223_v3 = vld [vmem:[%s1390_s4 + $0x60] sm:$0xff] (%p53_p10) }
  0x3c   :  { %288 = vperm.xlu1 (%p53_p10), %978, %v233_v29  }
  0x40   :  { %283 = vperm.xlu1 (%p53_p10), %978, %v232_v31  }
  0x44   :  { %278 = vperm.xlu1 (%p53_p10), %978, %v231_v37   ;;  %v255_v37 = vld [vmem:[#allocation6] sm:$0x1] (%p53_p10) }
  0x48   :  { %273 = vperm.xlu1 (%p53_p10), %978, %v230_v41   ;;  %v246_v41 = vld [vmem:[%s1393_s7 + $0x18] sm:$0xff] (%p53_p10) }
  0x4c   :  { %268 = vperm.xlu1 (%p53_p10), %978, %v229_v45   ;;  %v248_v45 = vld [vmem:[%s1410_s12 + $0x8] sm:$0xff] (%p53_p10) }
  0x50   :  { %263 = vperm.xlu1 (%p53_p10), %978, %v228_v49  }
  0x54   :  { %258 = vperm.xlu1 (%p53_p10), %978, %v227_v53  }
  0x55   :  { %296 = vxpose.xlu0.b32.start [1/16] (narrow) (%p53_p10), %v211_v25, 64  ;;  %v242_v25 = vld [vmem:[%s1392_s6 + $0x38] sm:$0xff] (%p53_p10) }
  0x59   :  { %297 = vxpose.xlu0.b32.cont [2/16] (narrow) (%p53_p10), %v212_v27, 64 }
  0x5d   :  { %298 = vxpose.xlu0.b32.cont [3/16] (narrow) (%p53_p10), %v213_v30, 64  ;;  %v251_v30 = vld [vmem:[%s1395_s9] sm:$0xff] (%p53_p10) }
  0x61   :  { %299 = vxpose.xlu0.b32.cont [4/16] (narrow) (%p53_p10), %v214_v35, 64  ;;  %v254_v35 = vld [vmem:[%s1409_s21 + $0x8] sm:$0xff] (%p53_p10) }
  0x65   :  { %300 = vxpose.xlu0.b32.cont [5/16] (narrow) (%p53_p10), %v215_v39, 64 }
  0x69   :  { %301 = vxpose.xlu0.b32.cont [6/16] (narrow) (%p53_p10), %v216_v43, 64  ;;  %v243_v43 = vld [vmem:[%s1393_s7] sm:$0xff] (%p53_p10) }
  0x6d   :  { %302 = vxpose.xlu0.b32.cont [7/16] (narrow) (%p53_p10), %v217_v47, 64  ;;  %v250_v47 = vld [vmem:[%s1410_s12 + $0x18] sm:$0xff] (%p53_p10) }
  0x71   :  { %303 = vxpose.xlu0.b32.cont [8/16] (narrow) (%p53_p10), %v218_v51, 64 }
  0x75   :  { %304 = vxpose.xlu0.b32.cont [9/16] (narrow) (%p53_p10), %v219_v55, 64 }
  0x79   :  { %305 = vxpose.xlu0.b32.cont [10/16] (narrow) (%p53_p10), %v220_v58, 64 }
  0x7d   :  { %306 = vxpose.xlu0.b32.cont [11/16] (narrow) (%p53_p10), %v221_v61, 64 }
  0x81   :  { %307 = vxpose.xlu0.b32.cont [12/16] (narrow) (%p53_p10), %v222_v0, 64 }
  0x85   :  { %308 = vxpose.xlu0.b32.cont [13/16] (narrow) (%p53_p10), %v223_v3, 64 }
  0x89   :  { %309 = vxpose.xlu0.b32.cont [14/16] (narrow) (%p53_p10), %v224_v6, 64 }
  0x8d   :  { %310 = vxpose.xlu0.b32.cont [15/16] (narrow) (%p53_p10), %v225_v9, 64 }
  0x91   :  { %311 = vxpose.xlu0.b32.end [16/16] (narrow) (%p53_p10), %v226_v12, 64 }
  0x98   : > { %v101_v17 = vpop.permute.xlu1 %100 }
  0x99   : > { %891 = vst.msk [vmem:[%s1155_s29 + $0x2] sm:$0x1] %vm72_vm1, %v101_v17 }
  0x9a   : > { %v70_v18 = vpop.permute.xlu0 %69 }
  0x9b   : > { %73 = vst.msk [vmem:[%s1155_s29] sm:$0x1] %vm72_vm1, %v70_v18  ;;  %v235_v18 = vld [vmem:[%s1392_s6] sm:$0xff] (%p53_p10) }
  0x9c   : > { %v116_v19 = vpop.permute.xlu1 %115  ;;  %477 = vxpose.xlu1.b32.start [1/8] (short) (narrow) (%p53_p10), %v235_v18, 32 }
  0x9d   : > { %894 = vst.msk [vmem:[%s1155_s29 + $0x3] sm:$0x1] %vm72_vm1, %v116_v19  ;;  %v236_v19 = vld [vmem:[%s1392_s6 + $0x8] sm:$0xff] (%p53_p10) }
  0x9e   : > { %v86_v20 = vpop.permute.xlu0 %85 }
  0x9f   : > { %888 = vst.msk [vmem:[%s1155_s29 + $0x1] sm:$0x1] %vm72_vm1, %v86_v20  ;;  %v237_v20 = vld [vmem:[%s1392_s6 + $0x10] sm:$0xff] (%p53_p10) }
  0xa0   :  { %478 = vxpose.xlu1.b32.cont [2/8] (short) (narrow) (%p53_p10), %v236_v19, 32 }
  0xa1   : > { %v146_v21 = vpop.permute.xlu1 %145 }
  0xa2   : > { %900 = vst.msk [vmem:[%s1155_s29 + $0x5] sm:$0x1] %vm72_vm1, %v146_v21  ;;  %v238_v21 = vld [vmem:[%s1392_s6 + $0x18] sm:$0xff] (%p53_p10) }
  0xa3   : > { %v131_v22 = vpop.permute.xlu0 %130 }
  0xa4   : > { %897 = vst.msk [vmem:[%s1155_s29 + $0x4] sm:$0x1] %vm72_vm1, %v131_v22  ;;  %479 = vxpose.xlu1.b32.cont [3/8] (short) (narrow) (%p53_p10), %v237_v20, 32  ;;  %v239_v22 = vld [vmem:[%s1392_s6 + $0x20] sm:$0xff] (%p53_p10) }
  0xa6   : > { %v176_v23 = vpop.permute.xlu1 %175  ;;  %55 = sbr.rel (!%p53_p10) target bundleno = 28 (0x1c), region = 91 }
  0xa7   : > { %906 = vst.msk [vmem:[%s1155_s29 + $0x7] sm:$0x1] %vm72_vm1, %v176_v23  ;;  %v240_v23 = vld [vmem:[%s1392_s6 + $0x28] sm:$0xff] (%p53_p10) }
  0xa8   :  { %480 = vxpose.xlu1.b32.cont [4/8] (short) (narrow) (%p53_p10), %v238_v21, 32 }
  0xa9   : > { %v161_v24 = vpop.permute.xlu0 %160 }
  0xaa   : > { %903 = vst.msk [vmem:[%s1155_s29 + $0x6] sm:$0x1] %vm72_vm1, %v161_v24  ;;  %v241_v24 = vld [vmem:[%s1392_s6 + $0x30] sm:$0xff] (%p53_p10) }
  0xac   :  { %481 = vxpose.xlu1.b32.cont [5/8] (short) (narrow) %v239_v22, 32 }
  0xb0   :  { %482 = vxpose.xlu1.b32.cont [6/8] (short) (narrow) %v240_v23, 32 }
  0xb1   :  { %v210_v32 = vld [vmem:[#allocation2 + $0xf8] sm:$0xff]  ;;  %v209_v34 = vld [vmem:[#allocation2 + $0xf0] sm:$0xff]  ;;  %v208_v38 = vld [vmem:[#allocation2 + $0xe8] sm:$0xff] }
  0xb2   :  { %v194_v33 = vld [vmem:[#allocation2 + $0x78] sm:$0xff]  ;;  %915 = vmatprep.subr.mxu0 %v210_v32  ;;  %v193_v36 = vld [vmem:[#allocation2 + $0x70] sm:$0xff]  ;;  %v192_v40 = vld [vmem:[#allocation2 + $0x68] sm:$0xff] }
  0xb3   :  { %916 = vmatpush3.xpose.msra.mxu0 %v194_v33  ;;  %v207_v42 = vld [vmem:[#allocation2 + $0xe0] sm:$0xff]  ;;  %v206_v46 = vld [vmem:[#allocation2 + $0xd8] sm:$0xff]  ;;  %v205_v50 = vld [vmem:[#allocation2 + $0xd0] sm:$0xff] }
  0xb4   :  { %917 = vmatprep.subr.mxu0 %v209_v34  ;;  %v191_v44 = vld [vmem:[#allocation2 + $0x60] sm:$0xff]  ;;  %v190_v48 = vld [vmem:[#allocation2 + $0x58] sm:$0xff]  ;;  %v189_v52 = vld [vmem:[#allocation2 + $0x50] sm:$0xff]  ;;  %483 = vxpose.xlu1.b32.cont [7/8] (short) (narrow) %v241_v24, 32 }
  0xb5   :  { %v204_v54 = vld [vmem:[#allocation2 + $0xc8] sm:$0xff]  ;;  %v203_v57 = vld [vmem:[#allocation2 + $0xc0] sm:$0xff]  ;;  %v202_v60 = vld [vmem:[#allocation2 + $0xb8] sm:$0xff] }
  0xb6   :  { %v188_v56 = vld [vmem:[#allocation2 + $0x48] sm:$0xff]  ;;  %v187_v59 = vld [vmem:[#allocation2 + $0x40] sm:$0xff]  ;;  %v186_v62 = vld [vmem:[#allocation2 + $0x38] sm:$0xff] }
  0xb7   :  { %918 = vmatpush3.xpose.msra.mxu0 %v193_v36  ;;  %v201_v63 = vld [vmem:[#allocation2 + $0xb0] sm:$0xff]  ;;  %v200_v2 = vld [vmem:[#allocation2 + $0xa8] sm:$0xff]  ;;  %v199_v5 = vld [vmem:[#allocation2 + $0xa0] sm:$0xff] }
  0xb8   :  { %919 = vmatprep.subr.mxu0 %v208_v38  ;;  %v185_v1 = vld [vmem:[#allocation2 + $0x30] sm:$0xff]  ;;  %v184_v4 = vld [vmem:[#allocation2 + $0x28] sm:$0xff]  ;;  %v183_v7 = vld [vmem:[#allocation2 + $0x20] sm:$0xff]  ;;  %484 = vxpose.xlu1.b32.end [8/8] (short) (narrow) %v242_v25, 32 }
  0xb9   :  { %v198_v8 = vld [vmem:[#allocation2 + $0x98] sm:$0xff]  ;;  %v197_v11 = vld [vmem:[#allocation2 + $0x90] sm:$0xff]  ;;  %v196_v14 = vld [vmem:[#allocation2 + $0x88] sm:$0xff] }
  0xba   :  { %v182_v10 = vld [vmem:[#allocation2 + $0x18] sm:$0xff]  ;;  %v181_v13 = vld [vmem:[#allocation2 + $0x10] sm:$0xff]  ;;  %v180_v15 = vld [vmem:[#allocation2 + $0x8] sm:$0xff]  ;;  %979 = vset.pattern.permute.xlu0 %v1047_v26 }
  0xbb   :  { %920 = vmatpush3.xpose.msra.mxu0 %v192_v40  ;;  %v195_v16 = vld [vmem:[#allocation2 + $0x80] sm:$0xff]  ;;  %v252_v26 = vld [vmem:[%s1395_s9 + $0x8] sm:$0xff]  ;;  %v1048_v40 = vmov 0.0   ;;  %474 = vperm.xlu0 %979, %v246_v41  }
  0xbc   :  { %921 = vmatprep.subr.mxu0 %v207_v42  ;;  %v179_v17 = vld [vmem:[#allocation2] sm:$0xff]  ;;  %586 = vmatprep.mubr.f32.mxu1 %v1048_v40  ;;  %v244_v42 = vld [vmem:[%s1393_s7 + $0x8] sm:$0xff]  ;;  %s1050_s7 = smov [#allocation7]  }
  0xbd   :  { %v253_v33 = vld [vmem:[%s1409_s21] sm:$0xff]  ;;  %s833_s27 = sshll.u32 %s1050_s7, 4  ;;  %s834_s27 = int_to_ptr.vmem [resolvable:$true] %s833_s27 }
  0xbe   :  { %s1012_s11 = scalar_lea.vmem %s834_s27, 32  ;;  %p1017_p12 = scmp.lt.s32.totalorder %s834_s27, %s834_s27 }
  0xbf   :  { %922 = vmatpush3.xpose.msra.mxu0 %v191_v44  ;;  %464 = vperm.xlu0 %979, %v244_v42   ;;  %v247_v44 = vld [vmem:[%s1410_s12] sm:$0xff]  ;;  %p1013_p11 = scmp.ne.s32.totalorder %s834_s27, %s1012_s11  ;;  %p1018_p13 = scmp.lt.s32.totalorder %s1012_s11, %s1012_s11 }
  0xc0   :  { %923 = vmatprep.subr.mxu0 %v206_v46  ;;  %v249_v46 = vld [vmem:[%s1410_s12 + $0x10] sm:$0xff] }
  0xc1   :  { %p1019_p0 = por %p1018_p13, %p1017_p12 }
  0xc3   :  { %924 = vmatpush3.xpose.msra.mxu0 %v190_v48  ;;  %459 = vperm.xlu0 %979, %v243_v43   ;;  %v294_v48 = vpop.permute.xlu1 %293  ;;  %p1020_p1 = pnand %p1019_p0, %p1013_p11 }
  0xc4   :  { %925 = vmatprep.subr.mxu0 %v205_v50 }
  0xc7   :  { %926 = vmatpush3.xpose.msra.mxu0 %v189_v52  ;;  %v289_v50 = vpop.permute.xlu1 %288 }
  0xc8   :  { %927 = vmatprep.subr.mxu0 %v204_v54 }
  0xcb   :  { %928 = vmatpush3.xpose.msra.mxu0 %v188_v56  ;;  %v284_v54 = vpop.permute.xlu1 %283 }
  0xcc   :  { %929 = vmatprep.subr.mxu0 %v203_v57 }
  0xcf   :  { %930 = vmatpush3.xpose.msra.mxu0 %v187_v59  ;;  %v279_v58 = vpop.permute.xlu1 %278 }
  0xd0   :  { %931 = vmatprep.subr.mxu0 %v202_v60 }
  0xd1   :  { %v312_v27 = vpop.trf.xlu0 }
  0xd2   :  { %947 = vmatprep.mubr.f32.mxu0 %v312_v27 }
  0xd3   :  { %932 = vmatpush3.xpose.msra.mxu0 %v186_v62  ;;  %v274_v62 = vpop.permute.xlu1 %273 }
  0xd4   :  { %933 = vmatprep.subr.mxu0 %v201_v63 }
  0xd5   :  { %v313_v29 = vpop.trf.xlu0 }
  0xd6   :  { %469 = vperm.xlu1 %978, %v245_v28  }
  0xd7   :  { %934 = vmatpush3.xpose.msra.mxu0 %v185_v1 }
  0xd8   :  { %935 = vmatprep.subr.mxu0 %v200_v2  ;;  %v269_v2 = vpop.permute.xlu1 %268 }
  0xd9   :  { %v314_v31 = vpop.trf.xlu0 }
  0xda   :  { %621 = vperm.xlu1 %978, %v251_v30  }
  0xdb   :  { %936 = vmatpush3.xpose.msra.mxu0 %v184_v4 }
  0xdc   :  { %937 = vmatprep.subr.mxu0 %v199_v5  ;;  %v264_v9 = vpop.permute.xlu1 %263 }
  0xdd   :  { %v315_v32 = vpop.trf.xlu0 }
  0xde   :  { %626 = vperm.xlu1 %978, %v252_v26  }
  0xdf   :  { %938 = vmatpush3.xpose.msra.mxu0 %v183_v7 }
  0xe0   :  { %939 = vmatprep.subr.mxu0 %v198_v8  ;;  %v259_v21 = vpop.permute.xlu1 %258 }
  0xe1   :  { %v316_v34 = vpop.trf.xlu0  ;;  %629 = vxpose.xlu0.b32.start [1/4] (short) (narrow) %v247_v44, 16 }
  0xe2   :  { %751 = vperm.xlu1 %978, %v253_v33  }
  0xe3   :  { %940 = vmatpush3.xpose.msra.mxu0 %v182_v10 }
  0xe4   :  { %941 = vmatprep.subr.mxu0 %v197_v11 }
  0xe5   :  { %v317_v36 = vpop.trf.xlu0  ;;  %630 = vxpose.xlu0.b32.cont [2/4] (short) (narrow) %v248_v45, 16 }
  0xe6   :  { %756 = vperm.xlu1 %978, %v254_v35  }
  0xe7   :  { %942 = vmatpush3.xpose.msra.mxu0 %v181_v13 }
  0xe8   :  { %943 = vmatprep.subr.mxu0 %v196_v14 }
  0xe9   :  { %v318_v38 = vpop.trf.xlu0  ;;  %631 = vxpose.xlu0.b32.cont [3/4] (short) (narrow) %v249_v46, 16 }
  0xea   :  { %779 = vperm.xlu1 %978, %v255_v37  }
  0xeb   :  { %944 = vmatpush3.xpose.msra.mxu0 %v180_v15 }
  0xec   :  { %945 = vmatprep.subr.mxu0 %v195_v16 }
  0xed   :  { %v319_v39 = vpop.trf.xlu0  ;;  %632 = vxpose.xlu0.b32.end [4/4] (short) (narrow) %v250_v47, 16 }
  0xef   :  { %946 = vmatpush3.xpose.msra.mxu0 %v179_v17 }
  0xf2   :  { %948 = vmatmul.mubr.f32.vlgmr.msra.gmra.mxu0 %v312_v27 }
  0xf3   :  { %949 = vmatprep.mubr.f32.mxu0 %v313_v29 }
  0xf6   :  { %950 = vmatmul.mubr.f32.gmra.mxu0 %v313_v29 }
  0xf7   :  { %951 = vmatprep.mubr.f32.mxu0 %v314_v31 }
  0xfa   :  { %952 = vmatmul.mubr.f32.gmra.mxu0 %v314_v31 }
  0xfb   :  { %953 = vmatprep.mubr.f32.mxu0 %v315_v32 }
  0xfe   :  { %954 = vmatmul.mubr.f32.gmra.mxu0 %v315_v32 }
  0xff   :  { %955 = vmatprep.mubr.f32.mxu0 %v316_v34 }
 0x102   :  { %956 = vmatmul.mubr.f32.gmra.mxu0 %v316_v34 }
 0x103   :  { %957 = vmatprep.mubr.f32.mxu0 %v317_v36 }
 0x106   :  { %958 = vmatmul.mubr.f32.gmra.mxu0 %v317_v36 }
 0x107   :  { %959 = vmatprep.mubr.f32.mxu0 %v318_v38 }
 0x10a   :  { %960 = vmatmul.mubr.f32.gmra.mxu0 %v318_v38 }
 0x10b   :  { %961 = vmatprep.mubr.f32.mxu0 %v319_v39 }
 0x10e   :  { %962 = vmatmul.mubr.f32.gmra.mxu0 %v319_v39 }
 0x118   :  { %v493_v34 = vpop.trf.xlu1 }
 0x11c   :  { %v494_v42 = vpop.trf.xlu1 }
 0x120   :  { %v495_v43 = vpop.trf.xlu1 }
 0x124   :  { %v496_v44 = vpop.trf.xlu1 }
 0x1b2   :  { %v394_v49 = vpop.f32.mrf.mxu0 }
 0x1b3   :  { %v395_v35 = vadd.f32 %v394_v49, %v259_v21 }
 0x1b4   :  { %v396_v51 = vpop.f32.mrf.mxu0 }
 0x1b5   :  { %v397_v32 = vadd.f32 %v396_v51, %v259_v21  ;;  %v441_v41 = vmax.f32 %v395_v35, 0.0 }
 0x1b6   :  { %v400_v52 = vpop.f32.mrf.mxu0 }
 0x1b7   :  { %v401_v31 = vadd.f32 %v400_v52, %v264_v9  ;;  %v442_v39 = vmax.f32 %v397_v32, 0.0 }
 0x1b8   :  { %v402_v53 = vpop.f32.mrf.mxu0 }
 0x1b9   :  { %v403_v29 = vadd.f32 %v402_v53, %v264_v9  ;;  %v443_v38 = vmax.f32 %v401_v31, 0.0 }
 0x1ba   :  { %v406_v55 = vpop.f32.mrf.mxu0 }
 0x1bb   :  { %v407_v27 = vadd.f32 %v406_v55, %v269_v2  ;;  %v444_v37 = vmax.f32 %v403_v29, 0.0 }
 0x1bc   :  { %v408_v56 = vpop.f32.mrf.mxu0 }
 0x1bd   :  { %v409_v24 = vadd.f32 %v408_v56, %v269_v2  ;;  %v445_v36 = vmax.f32 %v407_v27, 0.0 }
 0x1be   :  { %v412_v57 = vpop.f32.mrf.mxu0 }
 0x1bf   :  { %v413_v22 = vadd.f32 %v412_v57, %v274_v62  ;;  %v446_v33 = vmax.f32 %v409_v24, 0.0 }
 0x1c0   :  { %v414_v59 = vpop.f32.mrf.mxu0 }
 0x1c1   :  { %v415_v19 = vadd.f32 %v414_v59, %v274_v62  ;;  %v447_v26 = vmax.f32 %v413_v22, 0.0 }
 0x1c2   :  { %v418_v60 = vpop.f32.mrf.mxu0 }
 0x1c3   :  { %v419_v17 = vadd.f32 %v418_v60, %v279_v58  ;;  %v448_v30 = vmax.f32 %v415_v19, 0.0 }
 0x1c4   :  { %v420_v61 = vpop.f32.mrf.mxu0 }
 0x1c5   :  { %v421_v15 = vadd.f32 %v420_v61, %v279_v58  ;;  %v449_v28 = vmax.f32 %v419_v17, 0.0 }
 0x1c6   :  { %v424_v63 = vpop.f32.mrf.mxu0 }
 0x1c7   :  { %v425_v13 = vadd.f32 %v424_v63, %v284_v54  ;;  %v450_v25 = vmax.f32 %v421_v15, 0.0 }
 0x1c8   :  { %v426_v0 = vpop.f32.mrf.mxu0 }
 0x1c9   :  { %v427_v11 = vadd.f32 %v426_v0, %v284_v54  ;;  %v451_v23 = vmax.f32 %v425_v13, 0.0  ;;  %v470_v54 = vpop.permute.xlu1 %469 }
 0x1ca   :  { %v430_v1 = vpop.f32.mrf.mxu0 }
 0x1cb   :  { %v431_v10 = vadd.f32 %v430_v1, %v289_v50  ;;  %v452_v20 = vmax.f32 %v427_v11, 0.0 }
 0x1cc   :  { %v432_v3 = vpop.f32.mrf.mxu0 }
 0x1cd   :  { %v433_v7 = vadd.f32 %v432_v3, %v289_v50  ;;  %v453_v18 = vmax.f32 %v431_v10, 0.0  ;;  %v622_v11 = vpop.permute.xlu1 %621 }
 0x1ce   :  { %v436_v4 = vpop.f32.mrf.mxu0 }
 0x1cf   :  { %v437_v5 = vadd.f32 %v436_v4, %v294_v48  ;;  %v454_v16 = vmax.f32 %v433_v7, 0.0 }
 0x1d0   :  { %v438_v6 = vpop.f32.mrf.mxu0 }
 0x1d1   :  { %v439_v8 = vadd.f32 %v438_v6, %v294_v48  ;;  %v455_v14 = vmax.f32 %v437_v5, 0.0  ;;  %v475_v48 = vpop.permute.xlu0 %474 }
 0x1d3   :  { %v456_v12 = vmax.f32 %v439_v8, 0.0 }
 0x1d5   :  { %538 = vmatprep.subr.mxu1 %v456_v12  ;;  %v465_v52 = vpop.permute.xlu0 %464  ;;  %v627_v12 = vpop.permute.xlu1 %626 }
 0x1d6   :  { %539 = vmatpush1.msra.mxu1 %v455_v14 }
 0x1d7   :  { %540 = vmatprep.subr.mxu1 %v454_v16 }
 0x1d8   :  { %541 = vmatpush1.msra.mxu1 %v453_v18 }
 0x1d9   :  { %542 = vmatprep.subr.mxu1 %v452_v20  ;;  %v460_v62 = vpop.permute.xlu0 %459  ;;  %v752_v15 = vpop.permute.xlu1 %751 }
 0x1da   :  { %543 = vmatpush1.msra.mxu1 %v451_v23 }
 0x1db   :  { %544 = vmatprep.subr.mxu1 %v450_v25 }
 0x1dc   :  { %545 = vmatpush1.msra.mxu1 %v449_v28 }
 0x1dd   :  { %546 = vmatprep.subr.mxu1 %v448_v30  ;;  %v645_v7 = vpop.trf.xlu0  ;;  %v757_v25 = vpop.permute.xlu1 %756 }
 0x1de   :  { %547 = vmatpush1.msra.mxu1 %v447_v26 }
 0x1df   :  { %548 = vmatprep.subr.mxu1 %v446_v33 }
 0x1e0   :  { %549 = vmatpush1.msra.mxu1 %v445_v36 }
 0x1e1   :  { %550 = vmatprep.subr.mxu1 %v444_v37  ;;  %v646_v10 = vpop.trf.xlu0 }
 0x1e2   :  { %551 = vmatpush1.msra.mxu1 %v443_v38 }
 0x1e3   :  { %552 = vmatprep.subr.mxu1 %v442_v39 }
 0x1e4   :  { %553 = vmatpush1.msra.mxu1 %v441_v41 }
 0x1e5   :  { %907 = vmatmul.mubr.msk.f32.vlgmr.msra.gmra.mxu1 %vm509_vm2, %v493_v34 }
 0x1e6   :  { %592 = vmatprep.mubr.f32.mxu1 %v1048_v40 }
 0x1e9   :  { %908 = vmatmul.mubr.msk.f32.gmra.mxu1 %vm509_vm2, %v494_v42 }
 0x1ea   :  { %598 = vmatprep.mubr.f32.mxu1 %v1048_v40 }
 0x1ed   :  { %909 = vmatmul.mubr.msk.f32.gmra.mxu1 %vm509_vm2, %v495_v43  ;;  %v780_v43 = vpop.permute.xlu1 %779 }
 0x1ee   :  { %604 = vmatprep.mubr.f32.mxu1 %v1048_v40 }
 0x1f1   :  { %910 = vmatmul.mubr.msk.f32.gmra.mxu1 %vm509_vm2, %v496_v44 }
 0x1f2   :  { %732 = vmatprep.mubr.f32.mxu1 %v1048_v40 }
 0x2a5   :  { %v588_v45 = vpop.f32.mrf.mxu1 }
 0x2a6   :  { %v589_v3 = vadd.f32 %v588_v45, %v460_v62 }
 0x2a7   :  { %v590_v46 = vpop.f32.mrf.mxu1 }
 0x2a8   :  { %v591_v1 = vadd.f32 %v590_v46, %v460_v62  ;;  %v611_v9 = vmax.f32 %v589_v3, 0.0 }
 0x2a9   :  { %v594_v47 = vpop.f32.mrf.mxu1 }
 0x2aa   :  { %v595_v63 = vadd.f32 %v594_v47, %v465_v52  ;;  %v612_v8 = vmax.f32 %v591_v1, 0.0 }
 0x2ab   :  { %v596_v49 = vpop.f32.mrf.mxu1 }
 0x2ac   :  { %v597_v60 = vadd.f32 %v596_v49, %v465_v52  ;;  %v613_v6 = vmax.f32 %v595_v63, 0.0 }
 0x2ad   :  { %v600_v50 = vpop.f32.mrf.mxu1 }
 0x2ae   :  { %v601_v59 = vadd.f32 %v600_v50, %v470_v54  ;;  %v614_v5 = vmax.f32 %v597_v60, 0.0 }
 0x2af   :  { %v602_v51 = vpop.f32.mrf.mxu1 }
 0x2b0   :  { %v603_v57 = vadd.f32 %v602_v51, %v470_v54  ;;  %v615_v4 = vmax.f32 %v601_v59, 0.0 }
 0x2b1   :  { %v606_v53 = vpop.f32.mrf.mxu1 }
 0x2b2   :  { %v607_v55 = vadd.f32 %v606_v53, %v475_v48  ;;  %v616_v2 = vmax.f32 %v603_v57, 0.0 }
 0x2b3   :  { %v608_v56 = vpop.f32.mrf.mxu1 }
 0x2b4   :  { %v609_v58 = vadd.f32 %v608_v56, %v475_v48  ;;  %v617_v0 = vmax.f32 %v607_v55, 0.0 }
 0x2b6   :  { %v618_v61 = vmax.f32 %v609_v58, 0.0  ;;  %v1049_v58 = vmov 1966171168  }
 0x2b7   :  { %v808_v59 = vunpack.c.l.s4 %v1049_v58 }
 0x2b8   :  { %692 = vmatprep.subr.mxu1 %v618_v61 }
 0x2b9   :  { %693 = vmatpush1.msra.mxu1 %v617_v0  ;;  %v809_v62 = vunpack.c.0.s8 %v808_v59 }
 0x2ba   :  { %694 = vmatprep.subr.mxu1 %v616_v2 }
 0x2bb   :  { %695 = vmatpush1.msra.mxu1 %v615_v4 }
 0x2bc   :  { %696 = vmatprep.subr.mxu1 %v614_v5 }
 0x2bd   :  { %697 = vmatpush1.msra.mxu1 %v613_v6 }
 0x2be   :  { %698 = vmatprep.subr.mxu1 %v612_v8 }
 0x2bf   :  { %699 = vmatpush1.msra.mxu1 %v611_v9 }
 0x2c0   :  { %911 = vmatmul.mubr.msk.f32.vlgmr.msra.gmra.mxu1 %vm661_vm3, %v645_v7 }
 0x2c1   :  { %738 = vmatprep.mubr.f32.mxu1 %v1048_v40  ;;  %v782_v40 = vlaneseq }
 0x2c3   :  { %v783_v34 = vshrl.u32 %v782_v40, 7  ;;  %vm824_vm4 = vcmp.lt.s32.totalorder %v782_v40, 256 }
 0x2c4   :  { %912 = vmatmul.mubr.msk.f32.gmra.mxu1 %vm661_vm3, %v646_v10 }
 0x2c5   :  { %v784_v39 = vsub.s32 0, %v783_v34  ;;  %v812_v3 = vsub.s32 %v809_v62, %v783_v34 }
 0x2c7   :  { %v785_v46 = vrot.slane %v780_v43, %v784_v39 }
 0x380   :  { %v734_v13 = vpop.f32.mrf.mxu1 }
 0x381   :  { %v735_v14 = vadd.f32 %v734_v13, %v622_v11 }
 0x382   :  { %v736_v16 = vpop.f32.mrf.mxu1 }
 0x383   :  { %v737_v17 = vadd.f32 %v736_v16, %v622_v11  ;;  %v745_v19 = vmax.f32 %v735_v14, 0.0 }
 0x384   :  { %v740_v18 = vpop.f32.mrf.mxu1 }
 0x385   :  { %v741_v20 = vadd.f32 %v740_v18, %v627_v12  ;;  %v746_v22 = vmax.f32 %v737_v17, 0.0  ;;  %v759_v27 = vmul.f32 %v752_v15, %v745_v19 }
 0x386   :  { %v742_v21 = vpop.f32.mrf.mxu1 }
 0x387   :  { %v747_v23 = vmax.f32 %v741_v20, 0.0  ;;  %v743_v24 = vadd.f32 %v742_v21, %v627_v12  ;;  %v760_v30 = vmul.f32 %v752_v15, %v746_v22 }
 0x389   :  { %v761_v28 = vmul.f32 %v757_v25, %v747_v23  ;;  %v748_v29 = vmax.f32 %v743_v24, 0.0 }
 0x38b   :  { %v763_v31 = vadd.f32 %v761_v28, %v759_v27  ;;  %v762_v26 = vmul.f32 %v757_v25, %v748_v29 }
 0x38d   :  { %v764_v32 = vrot.slane %v763_v31, 4  ;;  %v770_v33 = vadd.f32 %v762_v26, %v760_v30 }
 0x38f   :  { %v765_v35 = vadd.f32 %v764_v32, %v763_v31  ;;  %v771_v36 = vrot.slane %v770_v33, 4 }
 0x391   :  { %v766_v37 = vrot.slane %v765_v35, 2  ;;  %v772_v38 = vadd.f32 %v771_v36, %v770_v33 }
 0x393   :  { %v767_v41 = vadd.f32 %v766_v37, %v765_v35  ;;  %v773_v42 = vrot.slane %v772_v38, 2 }
 0x395   :  { %v768_v44 = vrot.slane %v767_v41, 1  ;;  %v774_v45 = vadd.f32 %v773_v42, %v772_v38 }
 0x397   :  { %v769_v47 = vadd.f32 %v768_v44, %v767_v41  ;;  %v775_v48 = vrot.slane %v774_v45, 1 }
 0x399   :  { %v786_v49 = vadd.f32 %v785_v46, %v769_v47  ;;  %v776_v50 = vadd.f32 %v775_v48, %v774_v45 }
 0x39b   :  { %v913_v51 = vmul.f32 -1.442695, %v786_v49  ;;  %v787_v52 = vadd.f32 %v785_v46, %v776_v50 }
 0x39d   :  { %980 = vpow2.f32 %v913_v51  ;;  %v914_v53 = vmul.f32 -1.442695, %v787_v52 }
 0x39f   :  { %982 = vpow2.f32 %v914_v53 }
 0x3aa   :  { %v981_v54 = vpop.eup %980 }
 0x3ab   :  { %v794_v55 = vadd.f32 1.0, %v981_v54 }
 0x3ac   :  { %v983_v56 = vpop.eup %982 }
 0x3ad   :  { %v795_v57 = vadd.f32 1.0, %v983_v56  ;;  %984 = vrcp.f32 %v794_v55 }
 0x3af   :  { %986 = vrcp.f32 %v795_v57 }
 0x3ba   :  { %v985_v60 = vpop.eup %984 }
 0x3bb   :  { %v800_v61 = vmul.f32 4.0, %v985_v60 }
 0x3bc   :  { %v987_v63 = vpop.eup %986 }
 0x3bd   :  { %v801_v0 = vmul.f32 4.0, %v987_v63  ;;  %v802_v1 = vadd.f32 1.0, %v800_v61 }
 0x3bf   :  { %v803_v2 = vadd.f32 1.0, %v801_v0 }
 0x3c1   :  { %v806_v4 = vcombine.low %v802_v1, %v803_v2 }
 0x3c3   :  { %v813_v5 = vrot.slane %v806_v4, %v812_v3 }
 0x3c5   :  { %v820_v6 = vrot.slane %v813_v5, %v812_v3 }
 0x3c7   :  { %826 = vst.msk [vmem:[#allocation7] sm:$0x3] %vm824_vm4, %v820_v6 }
 0x3c8   :  { %1023 = shalt.err (!%p1020_p1)
}
 0x3c9   :  { %s1411_s5 = sld [smem:[#allocation13_spill]] }
 0x3cf   :  { %836 = dma.vmem_to_hbm [thread:$0]  %s834_s27, 32, %s1411_s5, [#allocation8]  }
 0x3d0   :  { %1038 = dma.done.wait [#allocation8], 32  }
 0x3d1   :  { %1039 = vsyncadd [#allocation8], 4294967264 }
 0x3d2   :  { %840 = vsyncpa [#allocation8], 1 }

</bundles_post_ra>
